<compile_context>
chip_gen: v7x
topology: tpu7x:2x2x1
jax: 0.10.0
libtpu: 0.0.40
codegen_flags: <defaults>
</compile_context>

<pallas_src>
import math

import jax
import jax.numpy as jnp
from jax.experimental import pallas as pl
from jax.experimental.pallas import tpu as pltpu


def _cfg_drop_kernel(drop_ref, emb_ref, cond_ref, out_ref):
    """One (batch, time-tile) block of the CFG token drop.

    drop_ref : (B,)           int32, SMEM (scalar prefetch) -- 1 if dropped
    emb_ref  : (1, 1, C)      cond dtype -- unconditional embedding (resident)
    cond_ref : (1, t_tile, C) cond dtype -- conditioning tokens block
    out_ref  : (1, t_tile, C) cond dtype -- output block
    """
    b = pl.program_id(0)
    dropped = drop_ref[b]

    @pl.when(dropped != 0)
    def _():
        out_ref[...] = jnp.broadcast_to(emb_ref[...], out_ref.shape)

    @pl.when(dropped == 0)
    def _():
        out_ref[...] = cond_ref[...]


def _pick_t_tile(T, C, itemsize, target_bytes=2 * 1024 * 1024):
    """Largest T tile that divides T, respects the dtype's sublane tiling, and
    keeps one block around the 1-4 MiB sweet spot."""
    sub = {4: 8, 2: 16, 1: 32}.get(itemsize, 8)
    if T * C * itemsize <= target_bytes or T % sub != 0:
        return T
    best = sub
    for d in range(sub, T, sub):
        if T % d == 0 and d * C * itemsize <= target_bytes:
            best = d
    return best


def _run_cfg_drop(condition, cfg_embedding, drop_i32, *, t_tile=None,
                  donate_condition=False):
    B, T, C = condition.shape
    itemsize = jnp.dtype(condition.dtype).itemsize
    if t_tile is None:
        t_tile = _pick_t_tile(T, C, itemsize)
    assert T % t_tile == 0, "t_tile must divide T"
    n_t = T // t_tile

    emb = cfg_embedding.astype(condition.dtype).reshape(1, 1, C)

    # index_maps receive the scalar-prefetch ref as a trailing positional arg.
    def emb_index_map(b, t, drop_ref):
        return (0, 0, 0)

    def cond_index_map(b, t, drop_ref):
        # Dropped batch -> pin the input block index to (0, 0, 0); the pipeline
        # sees an unchanged index for consecutive tiles and skips the read DMA.
        keep = 1 - drop_ref[b]
        return (b * keep, t * keep, 0)

    def out_index_map(b, t, drop_ref):
        return (b, t, 0)

    grid_spec = pltpu.PrefetchScalarGridSpec(
        num_scalar_prefetch=1,
        grid=(B, n_t),
        in_specs=[
            pl.BlockSpec((1, 1, C), emb_index_map),
            pl.BlockSpec((1, t_tile, C), cond_index_map),
        ],
        out_specs=pl.BlockSpec((1, t_tile, C), out_index_map),
    )

    bytes_accessed = 2 * B * T * C * itemsize + C * itemsize + B * 4

    # Flat input order at the call site: (drop_i32, emb, condition) -> index 2
    # (input_output_aliases indices count the scalar-prefetch operands).
    io_aliases = {2: 0} if donate_condition else {}

    return pl.pallas_call(
        _cfg_drop_kernel,
        out_shape=jax.ShapeDtypeStruct((B, T, C), condition.dtype),
        grid_spec=grid_spec,
        input_output_aliases=io_aliases,
        compiler_params=pltpu.CompilerParams(
            dimension_semantics=("parallel", "parallel"),
            vmem_limit_bytes=32 * 1024 * 1024,
        ),
        cost_estimate=pl.CostEstimate(
            flops=0, transcendentals=0, bytes_accessed=int(bytes_accessed)
        ),
    )(drop_i32, emb, condition)


class EmbeddingCFG:
    """JAX/Pallas port of ezaudio EmbeddingCFG (CFG label dropout)."""

    def __init__(self, in_channels, key):
        # nn.Parameter(torch.randn(in_channels) / in_channels ** 0.5)
        self.cfg_embedding = (
            jax.random.normal(key, (in_channels,), dtype=jnp.float32)
            / math.sqrt(in_channels)
        )

    def __call__(self, condition, condition_mask, cfg_prob=0.0, key=None,
                 t_tile=None, donate_condition=False):
        if condition_mask is not None:
            condition_mask = jnp.asarray(condition_mask)  # "clone"
        if cfg_prob <= 0.0:
            return condition, condition_mask
        if key is None:
            raise ValueError("cfg_prob > 0 requires a PRNG key")

        b, t = condition.shape[0], condition.shape[1]
        # drop_ids = torch.rand(b) < cfg_prob   (RNG glue stays in plain JAX)
        drop_ids = jax.random.uniform(key, (b,)) < cfg_prob

        cond_out = _run_cfg_drop(
            condition, self.cfg_embedding, drop_ids.astype(jnp.int32),
            t_tile=t_tile, donate_condition=donate_condition,
        )

        if condition_mask is not None:
            # mask[drop_ids] = False; mask[drop_ids, 0] = True  (tiny -> JAX)
            keep_first = (jnp.arange(t)[None, :] == 0).astype(condition_mask.dtype)
            condition_mask = jnp.where(drop_ids[:, None], keep_first, condition_mask)
        return cond_out, condition_mask


if __name__ == "__main__":
    key = jax.random.PRNGKey(0)
    k_param, k_cond, k_mask, k_drop = jax.random.split(key, 4)

    # --- test 1: small f32, mask present ------------------------------------
    B, T, C = 2, 8, 32
    module = EmbeddingCFG(in_channels=C, key=k_param)

    condition = jax.random.normal(k_cond, (B, T, C), dtype=jnp.float32)
    condition_mask = jax.random.uniform(k_mask, (B, T)) > 0.3  # bool (B, T)

    cond_out, mask_out = module(condition, condition_mask, cfg_prob=0.5, key=k_drop)
    cond_out = jax.block_until_ready(cond_out)
    mask_out = jax.block_until_ready(mask_out)

    # Pure-JAX reference.
    drop_ids = jax.random.uniform(k_drop, (B,)) < 0.5
    uncond = jnp.broadcast_to(module.cfg_embedding[None, None, :], (B, T, C))
    ref_cond = jnp.where(drop_ids[:, None, None], uncond, condition)
    ref_mask = jnp.where(drop_ids[:, None], jnp.arange(T)[None, :] == 0, condition_mask)

    assert cond_out.shape == (B, T, C) and cond_out.dtype == jnp.float32
    assert mask_out.shape == (B, T) and mask_out.dtype == jnp.bool_
    assert jnp.allclose(cond_out, ref_cond, atol=1e-6)
    assert jnp.array_equal(mask_out, ref_mask)

    # --- test 2: mask is None ------------------------------------------------
    cond_out2, mask_none = module(condition, None, cfg_prob=0.5, key=k_drop)
    jax.block_until_ready(cond_out2)
    assert mask_none is None and jnp.allclose(cond_out2, ref_cond, atol=1e-6)

    # --- test 3: cfg_prob = 0 passthrough ------------------------------------
    c0, m0 = module(condition, condition_mask, cfg_prob=0.0)
    assert jnp.array_equal(c0, condition) and jnp.array_equal(m0, condition_mask)

    # --- test 4: bf16, lane-dense C=128, multi-tile T grid --------------------
    B2, T2, C2 = 2, 32, 128
    mod2 = EmbeddingCFG(in_channels=C2, key=k_param)
    cond2 = jax.random.normal(k_cond, (B2, T2, C2), dtype=jnp.bfloat16)
    mask2 = jax.random.uniform(k_mask, (B2, T2)) > 0.5
    out2, m2 = mod2(cond2, mask2, cfg_prob=0.5, key=k_drop, t_tile=16)  # grid (2, 2)
    out2 = jax.block_until_ready(out2)

    drop2 = jax.random.uniform(k_drop, (B2,)) < 0.5
    uncond2 = jnp.broadcast_to(
        mod2.cfg_embedding.astype(jnp.bfloat16)[None, None, :], (B2, T2, C2)
    )
    ref2 = jnp.where(drop2[:, None, None], uncond2, cond2)
    ref_m2 = jnp.where(drop2[:, None], jnp.arange(T2)[None, :] == 0, mask2)
    assert out2.dtype == jnp.bfloat16
    assert jnp.array_equal(out2, ref2)
    assert jnp.array_equal(m2, ref_m2)

    # --- test 5: aliased (donated) condition path -----------------------------
    out3, m3 = mod2(cond2, mask2, cfg_prob=0.5, key=k_drop, t_tile=16,
                    donate_condition=True)
    out3 = jax.block_until_ready(out3)
    assert jnp.array_equal(out3, ref2)
    assert jnp.array_equal(m3, ref_m2)

    print("KERNEL_OK")
</pallas_src>

<mosaic_0001>
module attributes {stable_mosaic.version = 11 : i64} {
  func.func @_cfg_drop_kernel(%arg0: i32, %arg1: i32, %arg2: memref<2xi32, #tpu.memory_space<smem>>, %arg3: memref<1x1x32xf32, #tpu.memory_space<vmem>>, %arg4: memref<1x8x32xf32, #tpu.memory_space<vmem>>, %arg5: memref<1x8x32xf32, #tpu.memory_space<vmem>>) attributes {dimension_semantics = [#tpu.dimension_semantics<parallel>, #tpu.dimension_semantics<parallel>], iteration_bounds = array<i64: 2, 1>, scalar_prefetch = 1 : i64, scratch_operands = 0 : i64, tpu.core_type = #tpu.core_type<tc>, window_params = [{pipeline_mode = #tpu.pipeline_mode<synchronous>, transform_indices = @transform_0, window_bounds = array<i64: 1, 1, 32>}, {transform_indices = @transform_1, window_bounds = array<i64: 1, 8, 32>}, {transform_indices = @transform_2, window_bounds = array<i64: 1, 8, 32>}]} {
    %0 = arith.index_cast %arg0 : i32 to index
    %1 = memref.load %arg2[%0] : memref<2xi32, #tpu.memory_space<smem>>
    %c0_i32 = arith.constant 0 : i32
    %2 = arith.cmpi ne, %1, %c0_i32 : i32
    %3 = arith.extui %2 : i1 to i32
    %c0_i32_0 = arith.constant 0 : i32
    %4 = arith.cmpi ne, %3, %c0_i32_0 : i32
    scf.if %4 {
      %c0 = arith.constant 0 : index
      %c0_3 = arith.constant 0 : index
      %c0_4 = arith.constant 0 : index
      %8 = vector.load %arg3[%c0, %c0_3, %c0_4] : memref<1x1x32xf32, #tpu.memory_space<vmem>>, vector<1x1x32xf32>
      %9 = vector.shape_cast %8 : vector<1x1x32xf32> to vector<1x1x32xf32>
      %10 = vector.broadcast %9 : vector<1x1x32xf32> to vector<1x8x32xf32>
      %c0_5 = arith.constant 0 : index
      %c0_6 = arith.constant 0 : index
      %c0_7 = arith.constant 0 : index
      %11 = vector.load %arg5[%c0_5, %c0_6, %c0_7] : memref<1x8x32xf32, #tpu.memory_space<vmem>>, vector<1x8x32xf32>
      tpu.vector_store %arg5[%c0_5, %c0_6, %c0_7], %10 {strides = array<i32>} : memref<1x8x32xf32, #tpu.memory_space<vmem>>, vector<1x8x32xf32>,
    } else {
    }
    %c0_i32_1 = arith.constant 0 : i32
    %5 = arith.cmpi eq, %1, %c0_i32_1 : i32
    %6 = arith.extui %5 : i1 to i32
    %c0_i32_2 = arith.constant 0 : i32
    %7 = arith.cmpi ne, %6, %c0_i32_2 : i32
    scf.if %7 {
      %c0 = arith.constant 0 : index
      %c0_3 = arith.constant 0 : index
      %c0_4 = arith.constant 0 : index
      %8 = vector.load %arg4[%c0, %c0_3, %c0_4] : memref<1x8x32xf32, #tpu.memory_space<vmem>>, vector<1x8x32xf32>
      %c0_5 = arith.constant 0 : index
      %c0_6 = arith.constant 0 : index
      %c0_7 = arith.constant 0 : index
      %9 = vector.load %arg5[%c0_5, %c0_6, %c0_7] : memref<1x8x32xf32, #tpu.memory_space<vmem>>, vector<1x8x32xf32>
      tpu.vector_store %arg5[%c0_5, %c0_6, %c0_7], %8 {strides = array<i32>} : memref<1x8x32xf32, #tpu.memory_space<vmem>>, vector<1x8x32xf32>,
    } else {
    }
    return
  }
  func.func @transform_0(%arg0: i32, %arg1: i32, %arg2: memref<2xi32, #tpu.memory_space<smem>>) -> (i32, i32, i32) {
    %c0_i32 = arith.constant 0 : i32
    %c0_i32_0 = arith.constant 0 : i32
    %c0_i32_1 = arith.constant 0 : i32
    %c0_i32_2 = arith.constant 0 : i32
    return %c0_i32, %c0_i32_0, %c0_i32_1 : i32, i32, i32
  }
  func.func @transform_1(%arg0: i32, %arg1: i32, %arg2: memref<2xi32, #tpu.memory_space<smem>>) -> (i32, i32, i32) {
    %0 = arith.index_cast %arg0 : i32 to index
    %1 = memref.load %arg2[%0] : memref<2xi32, #tpu.memory_space<smem>>
    %c1_i32 = arith.constant 1 : i32
    %2 = arith.subi %c1_i32, %1 : i32
    %3 = arith.muli %arg0, %2 : i32
    %4 = arith.muli %arg1, %2 : i32
    %c0_i32 = arith.constant 0 : i32
    %c0_i32_0 = arith.constant 0 : i32
    return %3, %4, %c0_i32 : i32, i32, i32
  }
  func.func @transform_2(%arg0: i32, %arg1: i32, %arg2: memref<2xi32, #tpu.memory_space<smem>>) -> (i32, i32, i32) {
    %c0_i32 = arith.constant 0 : i32
    %c0_i32_0 = arith.constant 0 : i32
    return %arg0, %arg1, %c0_i32 : i32, i32, i32
  }
}

</mosaic_0001>

<bundles_post_ra>
// kernel: tpu_custom_call.1
= control target key start
LH: loop header
LB: loop body
LE: loop exit
PB: predicated region body
PF: predicated region fallthrough
CT: control target
= control target key end

     0   :  { %s811_s0 = inlined_call_operand.hbm [shape: s32[2], index: 0, kind: input, shape index: {}]   ;;  %s812_s1 = inlined_call_operand.vmem [shape: f32[1,1,32], index: 1, kind: input, shape index: {}]   ;;  %s813_s2 = inlined_call_operand.hbm [shape: f32[2,8,32], index: 2, kind: input, shape index: {}]   ;;  %s814_s3 = inlined_call_operand.hbm [shape: f32[2,8,32], index: 3, kind: output, shape index: {}]  }
   0x1   :  { %s420_s14 = scalar_lea.hbm %s811_s0, 16 }
   0x2   :  { %p421_p0 = scmp.ne.s32.totalorder %s811_s0, %s420_s14  ;;  %p424_p1 = scmp.lt.u32.totalorder %s420_s14, %s811_s0 }
   0x4   :  { %p426_p2 = pnand %p424_p1, %p421_p0 }
   0x6   :  { %429 = shalt.err (!%p426_p2)  }
   0x7   :  { %s570_s19 = smov [#allocation3]  }
   0x8   :  { %9 = dma.hbm_to_smem %s811_s0, 16, %s570_s19, [#allocation2] }
   0x9   :  { %524 = dma.done.wait [#allocation2], 16 }
   0xa   :  { %525 = vsyncadd [#allocation2], 4294967280 }
   0xb   :  { %11 = sfence }
   0xc   :  { %12 = vsyncpa [#allocation5], 0 }
   0xd   :  { %14 = vsyncpa [#allocation5 + $0x1], 0 }
   0xe   :  { %15 = vsyncpa [#allocation6], 0 }
   0xf   :  { %17 = vsyncpa [#allocation6 + $0x1], 0  ;;  %s605_s22 = smov 0   ;;  %s607_s23 = smov 0  }
  0x10   :  { %s609_s24 = smov 0   ;;  %s611_s25 = smov 0  }
  0x11   :  { %s613_s26 = smov 0   ;;  %s615_s27 = smov 0  }
  0x12   :  { %s617_s0 = smov 0   ;;  %s619_s28 = smov 0  }
  0x13   :  { %s621_s29 = smov 0  }
  0x14 LB: > { %s313_s30 = sadd.s32 4294967295, %s568_s29   ;;  %s314_s4 = sadd.s32 4294967294, %s568_s29   ;;  %s568_s29 = sphi %s621_s29, %s23_s29   ;;  %s564_s28 = sphi %s619_s28, %s838_s28   ;;  %s560_s0 = sphi %s617_s0, %s837_s0   ;;  %s556_s27 = sphi %s615_s27, %s836_s27   ;;  %s552_s26 = sphi %s613_s26, %s835_s26   ;;  %s548_s25 = sphi %s611_s25, %s834_s25   ;;  %s544_s24 = sphi %s609_s24, %s833_s24   ;;  %s540_s23 = sphi %s607_s23, %s832_s23   ;;  %s536_s22 = sphi %s605_s22, %s831_s22  }
  0x15   : > { %s35_s5 = sadd.s32 1, %s564_s28  ;;  %s60_s6 = sld [smem:[#allocation3 + %s564_s28]] }
  0x16   : > { %p37_p3 = scmp.ge.s32.totalorder %s35_s5, 2  ;;  %s73_s7 = sadd.s32 1, %s556_s27 }
  0x17   : > { %p80_p4 = scmp.ne.s32.totalorder %s556_s27, %s552_s26  ;;  %p81_p5 = scmp.eq.s32.totalorder %s568_s29, 0 }
  0x18   : > { %s840_s5 = smov (%p37_p3, %s35_s5), 0  ;;  %p86_p7 = scmp.ne.s32.totalorder %s552_s26, %s548_s25 }
  0x19   : > { %818 = sst [smem:[#allocation13_spill]] %s840_s5  ;;  %p658_p6 = por %p81_p5, %p80_p4 }
  0x1a   : > { %s64_s9 = sld [smem:[#allocation3 + %s840_s5]]  ;;  %p87_p8 = scmp.eq.s32.totalorder %s313_s30, 0 }
  0x1b   : > { %s61_s10 = ssub.s32 1, %s60_s6  ;;  %s96_s11 = ssub.s32 %s564_s28, %s840_s5 }
  0x1c   : > { %s62_s12 = smul.u32 %s564_s28, %s61_s10  ;;  %p667_p9 = por %p87_p8, %p86_p7 }
  0x1d   : > { %p99_p10 = scmp.eq.s32.totalorder %s96_s11, 0  ;;  %s101_s14 = sadd.s32 1, %s544_s24 }
  0x1e   : > { %s820_s13 = scalar_select %p667_p9, 1, 0 }
  0x1f   : > { %p111_p11 = scmp.ne.s32.totalorder %s544_s24, %s540_s23  ;;  %p112_p12 = scmp.eq.s32.totalorder %s313_s30, 1 }
  0x20   : > { %s675_s15 = scalar_select %p99_p10, %s544_s24, %s101_s14  }
  0x21   : > { %s65_s16 = ssub.s32 1, %s64_s9  ;;  %p677_p13 = por %p112_p12, %p111_p11 }
  0x22   : > { %s66_s18 = smul.u32 %s65_s16, %s840_s5  ;;  %p117_p0 = scmp.ne.s32.totalorder %s540_s23, %s536_s22 }
  0x23   : > { %s821_s17 = scalar_select %p677_p13, 1, 0 }
  0x24   : > { %p118_p1 = scmp.eq.s32.totalorder %s314_s4, 1  ;;  %s68_s19 = ssub.s32 %s62_s12, %s66_s18 }
  0x25   : > { %p345_p3 = scmp.lt.s32.totalorder %s568_s29, 2  ;;  %p71_p4 = scmp.eq.s32.totalorder %s68_s19, 0 }
  0x26   : > { %p686_p5 = por %p118_p1, %p117_p0  ;;  %s141_s30 = sand.u32 1, %s556_s27  }
  0x27   : > { %p692_p7 = pnand %p345_p3, %p658_p6  ;;  %s317_s9 = sshll.u32 %s141_s30, 3 }
  0x28   : > { %s822_s20 = scalar_select %p686_p5, 1, 0 }
  0x29   : > { %s697_s25 = scalar_select %p71_p4, %s556_s27, %s73_s7  }
  0x2a   : > { %s329_s4 = scalar_select %p658_p6, [#allocation3], [#allocation8] }
  0x2b   : > { %s330_s6 = scalar_select %p658_p6, %s564_s28, 0 }
  0x2c   : > { %s842_s4 = smov (!%p345_p3, %s329_s4), [#allocation9]  ;;  %p319_p8 = scmp.ge.s32.totalorder %s568_s29, 1 }
  0x2d   : > { %s844_s6 = smov (!%p345_p3, %s330_s6), 0  ;;  %p162_p10 = scmp.lt.s32.totalorder %s568_s29, 3 }
  0x2e   : > { %s146_s10 = sld [smem:[%s842_s4 + %s844_s6]]  ;;  %s145_s12 = scalar_lea.vmem [#allocation4], %s317_s9 }
  0x2f   : > { %p707_p11 = pnand %p319_p8, %p162_p10  ;;  %s157_s7 = sshll.u32 %s145_s12, 4  ;;  %s712_s7 = int_to_ptr.vmem [resolvable:$true] %s157_s7 }
  0x30   : > { %s142_s4 = scalar_lea.sflag [#allocation5], %s141_s30  ;;  %p432_p12 = pneg %p692_p7 }
  0x31   : > { %s435_s12 = scalar_lea.hbm %s813_s2, 256 }
  0x34   : > { %s147_s14 = ssub.s32 1, %s146_s10 }
  0x35   : > { %s148_s16 = smul.u32 %s564_s28, %s147_s14 }
  0x37   : > { %s318_s8 = sshll.u32 %s148_s16, 7 }
  0x38   : > { %s717_s5 = scalar_lea.hbm %s813_s2, %s318_s8 }
  0x39   : > { %s430_s6 = scalar_lea.hbm %s717_s5, 128  ;;  %p436_p3 = scmp.lt.u32.totalorder %s717_s5, %s813_s2 }
  0x3a   : > { %p431_p6 = scmp.ne.s32.totalorder %s717_s5, %s430_s6  ;;  %p437_p4 = scmp.lt.u32.totalorder %s435_s12, %s430_s6 }
  0x3b   : > { %p439_p10 = scmp.lt.u32.totalorder %s430_s6, %s717_s5 }
  0x3c   : > { %p433_p0 = pnand %p432_p12, %p431_p6  ;;  %p438_p8 = por %p437_p4, %p436_p3 }
  0x3e   : > { %p434_p1 = pneg %p433_p0  ;;  %p440_p2 = por %p439_p10, %p438_p8 }
  0x40   : > { %p441_p5 = pnand %p440_p2, %p434_p1 }
  0x42   : > { %444 = shalt.err (!%p441_p5)
}
  0x43   : > { %s445_s30 = scalar_lea.vmem %s712_s7, 128  ;;  %s571_s8 = smov [#allocation4]  }
  0x44   : > { %p446_p6 = scmp.ne.s32.totalorder %s712_s7, %s445_s30  ;;  %s450_s18 = sshll.u32 %s571_s8, 4  ;;  %s451_s18 = int_to_ptr.vmem [resolvable:$false] %s450_s18 }
  0x45   : > { %s452_s19 = scalar_lea.vmem %s451_s18, 256  ;;  %p453_p9 = scmp.lt.s32.totalorder %s712_s7, %s451_s18 }
  0x46   : > { %p448_p0 = pnand %p446_p6, %p432_p12  ;;  %p454_p3 = scmp.lt.s32.totalorder %s452_s19, %s445_s30 }
  0x48   : > { %p449_p13 = pneg %p448_p0  ;;  %p455_p4 = por %p454_p3, %p453_p9 }
  0x4a   : > { %p456_p8 = pnand %p455_p4, %p449_p13 }
  0x4c   : > { %459 = shalt.err (!%p456_p8)
}
  0x4d   : > { %340 = dma.hbm_to_vmem [thread:$0]  (!%p692_p7), %s717_s5, 128, %s712_s7, %s142_s4  }
  0x4e   : > { %166 = sbr.rel (%p707_p11) target bundleno = 135 (0x87), region = 28  ;;  %s168_s6 = sand.u32 (!%p707_p11), 1, %s552_s26  }
  0x4f   : > { %s320_s9 = sshll.u32 (!%p707_p11), %s168_s6, 3  ;;  %s169_s10 = scalar_lea.sflag (!%p707_p11), [#allocation5], %s168_s6 }
  0x50   : > { %s172_s12 = scalar_lea.vmem (!%p707_p11), [#allocation4], %s320_s9  ;;  %p825_p2 = scmp.ne.s32.totalorder (!%p707_p11), %s820_s13, 0 }
  0x55   : > { %527 = dma.done.wait (%p825_p2), %s169_s10, 128  }
  0x56   : > { %529 = vsyncadd (%p825_p2), %s169_s10, 4294967168  ;;  %s190_s21 = sand.u32 1, %s540_s23   ;;  %s197_s14 = sld [smem:[#allocation3 + %s560_s0]] }
  0x57   : > { %s321_s16 = sshll.u32 %s190_s21, 3 }
  0x58   : > { %s192_s5 = scalar_lea.vmem [#allocation7], %s321_s16 }
  0x5c   : > { %p322_p9 = scmp.eq.s32.totalorder %s197_s14, 0 }
  0x5d   : > { %v323_v0 = vld [vmem:[%s812_s1] ss:$0 sm:$0xff] (!%p322_p9)  ;;  %vm209_vm0 = vcmask (!%p322_p9), 261120  }
  0x5e   : > { %201 = sbr.rel (%p322_p9) target bundleno = 101 (0x65), region = 36  ;;  %210 = vst.msk [vmem:[%s192_s5] sm:$0xff] (!%p322_p9), %vm209_vm0, %v323_v0 }
  0x65 PF: > { %p324_p13 = scmp.ne.s32.totalorder %s197_s14, 0 }
  0x66   : > { %v215_v1 = vld [vmem:[%s172_s12] sm:$0xff] (!%p324_p13)  ;;  %vm216_vm1 = vcmask (!%p324_p13), 261120  }
  0x67   : > { %214 = sbr.rel (%p324_p13) target bundleno = 110 (0x6e), region = 40  ;;  %217 = vst.msk [vmem:[%s192_s5] sm:$0xff] (!%p324_p13), %vm216_vm1, %v215_v1 }
  0x6e PF: > { %s326_s13 = sshll.u32 %s560_s0, 7  ;;  %s233_s18 = sshll.u32 %s192_s5, 4  ;;  %s234_s18 = int_to_ptr.vmem [resolvable:$true] %s233_s18 }
  0x6f   : > { %s760_s8 = scalar_lea.hbm %s814_s3, %s326_s13  ;;  %s219_s19 = scalar_lea.sflag [#allocation6], %s190_s21 }
  0x70   : > { %s460_s6 = scalar_lea.vmem %s234_s18, 128  ;;  %p826_p7 = scmp.ne.s32.totalorder %s821_s17, 0 }
  0x71   : > { %p461_p5 = scmp.ne.s32.totalorder %s234_s18, %s460_s6  ;;  %s572_s9 = smov [#allocation7]  }
  0x72   : > { %s464_s10 = sshll.u32 %s572_s9, 4  ;;  %s465_s10 = int_to_ptr.vmem [resolvable:$false] %s464_s10 }
  0x73   : > { %p462_p11 = pnand %p461_p5, %p826_p7  ;;  %s466_s12 = scalar_lea.vmem %s465_s10, 256 }
  0x74   : > { %p467_p1 = scmp.lt.s32.totalorder %s234_s18, %s465_s10  ;;  %p468_p10 = scmp.lt.s32.totalorder %s466_s12, %s460_s6 }
  0x75   : > { %p463_p12 = pneg %p462_p11 }
  0x76   : > { %p469_p6 = por %p468_p10, %p467_p1 }
  0x78   : > { %p470_p0 = pnand %p469_p6, %p463_p12 }
  0x7a   : > { %473 = shalt.err (!%p470_p0)
}
  0x7b   : > { %s474_s0 = scalar_lea.hbm %s760_s8, 128  ;;  %s478_s16 = scalar_lea.hbm %s814_s3, 256 }
  0x7c   : > { %p475_p3 = scmp.ne.s32.totalorder %s760_s8, %s474_s0  ;;  %p479_p2 = scmp.lt.u32.totalorder %s760_s8, %s814_s3 }
  0x7d   : > { %p480_p9 = scmp.lt.u32.totalorder %s478_s16, %s474_s0  ;;  %p482_p5 = scmp.lt.u32.totalorder %s474_s0, %s760_s8 }
  0x7e   : > { %p476_p4 = pnand %p475_p3, %p826_p7 }
  0x7f   : > { %p481_p13 = por %p480_p9, %p479_p2 }
  0x80   : > { %p477_p8 = pneg %p476_p4 }
  0x81   : > { %p483_p11 = por %p482_p5, %p481_p13 }
  0x83   : > { %p484_p12 = pnand %p483_p11, %p477_p8 }
  0x85   : > { %487 = shalt.err (!%p484_p12)
}
  0x86   : > { %333 = dma.vmem_to_hbm [thread:$0]  (%p826_p7), %s234_s18, 128, %s760_s8, %s219_s19  }
  0x87 PF: > { %s245_s7 = sand.u32 1, %s536_s22   ;;  %p827_p1 = scmp.ne.s32.totalorder %s822_s20, 0 }
  0x88   : > { %p828_p10 = scmp.ge.s32.totalorder %s568_s29, 2  ;;  %s246_s13 = scalar_lea.sflag [#allocation6], %s245_s7 }
  0x8a   : > { %p342_p6 = pnand %p828_p10, %p827_p1 }
  0x8c   : > { %531 = dma.done.wait (!%p342_p6), %s246_s13, 128  }
  0x8d   : > { %533 = vsyncadd (!%p342_p6), %s246_s13, 4294967168  ;;  %s23_s29 = sadd.s32 1, %s568_s29   ;;  %s829_s17 = smov %s697_s25 }
  0x8e   : > { %p20_p0 = scmp.ge.s32.totalorder %s23_s29, 4   ;;  %s830_s4 = sld [smem:[#allocation13_spill]] }
  0x8f   : > { %s831_s22 = smov %s540_s23  ;;  %s832_s23 = smov %s544_s24 }
  0x90   : > { %s833_s24 = smov %s675_s15  ;;  %s834_s25 = smov %s552_s26 }
  0x91   : > { %s835_s26 = smov %s556_s27  ;;  %s836_s27 = smov %s829_s17 }
  0x92   : > { %s837_s0 = smov %s564_s28  ;;  %22 = sbr.rel (!%p20_p0) target bundleno = 20 (0x14), region = 81 }
  0x94   : > { %s838_s28 = smov %s830_s4 }
  0x99   :  { %251 = vsyncpa [#allocation5], 1 }
  0x9a   :  { %253 = vsyncpa [#allocation5 + $0x1], 1 }
  0x9b   :  { %254 = vsyncpa [#allocation6], 1 }
  0x9c   :  { %256 = vsyncpa [#allocation6 + $0x1], 1 }

</bundles_post_ra>
